<compile_context>
chip_gen: v7x
topology: tpu7x:2x2x1
jax: 0.10.0
libtpu: 0.0.40
codegen_flags: <defaults>
</compile_context>

<pallas_src>
import functools

import jax
import jax.numpy as jnp
from jax import lax
from jax.experimental import pallas as pl
from jax.experimental.pallas import tpu as pltpu

_NEG_INF = -1.0e30


def _round_up(x, m):
    return ((x + m - 1) // m) * m


def _vmem_limit_bytes(needed_bytes):
    """Generation-aware VMEM limit (v7x has 64 MiB/TC, v5e/v6e have 128 MiB)."""
    try:
        cap = int(pltpu.get_tpu_info().vmem_capacity_bytes)
    except Exception:
        cap = 64 << 20  # safe lower bound
    hi = max(cap - (8 << 20), 16 << 20)
    return int(min(max(int(needed_bytes) + (4 << 20), 16 << 20), hi))


# --------------------------------------------------------------------------
# Kernel 1: QKV projection, weight tiled along the q/k/v column blocks.
# --------------------------------------------------------------------------
def _qkv_proj_kernel(x_ref, w_ref, o_ref):
    o_ref[0] = jnp.dot(x_ref[0], w_ref[...],
                       preferred_element_type=jnp.float32).astype(o_ref.dtype)


# --------------------------------------------------------------------------
# Kernel 2: flash attention (online softmax) + fused output projection.
# --------------------------------------------------------------------------
def _flash_attn_kernel(q_ref, k_ref, v_ref, wo_ref, bo_ref, o_ref,
                       m_sc, l_sc, acc_sc, *,
                       tq, tk, n_valid, causal, has_pad, compute_dtype,
                       exp_bf16):
    qi = pl.program_id(1)
    ki = pl.program_id(2)
    nk = pl.num_programs(2)

    @pl.when(ki == 0)
    def _init():
        m_sc[...] = jnp.full(m_sc.shape, _NEG_INF, dtype=m_sc.dtype)
        l_sc[...] = jnp.zeros(l_sc.shape, dtype=l_sc.dtype)
        acc_sc[...] = jnp.zeros(acc_sc.shape, dtype=acc_sc.dtype)

    def _compute():
        q = q_ref[0]                                                # (tq, di)
        k = k_ref[0]                                                # (tk, di)
        # s = q @ k^T without materializing a transpose (contract last dims).
        s = lax.dot_general(q, k, (((1,), (1,)), ((), ())),
                            preferred_element_type=jnp.float32)     # (tq, tk)

        if causal or has_pad:
            cols = ki * tk + lax.broadcasted_iota(jnp.int32, s.shape, 1)
            if causal:
                rows = qi * tq + lax.broadcasted_iota(jnp.int32, s.shape, 0)
                # Fuse the pad bound into the causal bound: one compare+select.
                bound = jnp.minimum(rows, n_valid - 1) if has_pad else rows
                invalid = cols > bound
            else:
                invalid = cols >= n_valid
            s = jnp.where(invalid, _NEG_INF, s)
        # Invariant (fully-masked-row safety): at ki == 0 every query row sees
        # column 0 (always valid and causally visible), so m_sc is finite before
        # any fully-masked row can appear -> exp underflows to exactly 0 there.

        m_prev = m_sc[...]
        m_new = jnp.maximum(m_prev, jnp.max(s, axis=-1, keepdims=True))
        alpha = jnp.exp(m_prev - m_new)
        if exp_bf16:
            # bf16 EUP exp (v6e/v7x); p is needed in bf16 for the PV matmul anyway.
            p = jnp.exp((s - m_new).astype(jnp.bfloat16))
            p_f32 = p.astype(jnp.float32)
        else:
            p_f32 = jnp.exp(s - m_new)
            p = p_f32.astype(compute_dtype)
        l_sc[...] = alpha * l_sc[...] + jnp.sum(p_f32, axis=-1, keepdims=True)
        acc_sc[...] = alpha * acc_sc[...] + jnp.dot(
            p, v_ref[0], preferred_element_type=jnp.float32)
        m_sc[...] = m_new

    if causal:
        # Last KV tile that intersects the causal band of this q tile.
        last_ki = (qi * tq + (tq - 1)) // tk
        @pl.when(ki <= last_ki)
        def _():
            _compute()
        finalize_pred = ki == last_ki
    else:
        _compute()
        finalize_pred = ki == nk - 1

    @pl.when(finalize_pred)
    def _finalize():
        out = acc_sc[...] * pl.reciprocal(l_sc[...], approx=True)   # (tq, di)
        proj = jnp.dot(out.astype(compute_dtype), wo_ref[...],
                       preferred_element_type=jnp.float32)          # (tq, do)
        o_ref[0] = (proj + bo_ref[...]).astype(o_ref.dtype)


# --------------------------------------------------------------------------
# Wrapper
# --------------------------------------------------------------------------
def attention_pallas(x, w_qkv, w_out, b_out, *, dim_inner, causal=False,
                     use_bf16=True, q_seq_tile=512, kv_seq_tile=256):
    """x: (B, N, dim_in); w_qkv: (dim_in, 3*dim_inner); w_out: (dim_inner, dim_out);
    b_out: (dim_out,).  Returns (B, N, dim_out) in x.dtype."""
    B, N, dim_in = x.shape
    dim_out = w_out.shape[1]
    assert w_qkv.shape == (dim_in, 3 * dim_inner)
    scale = float(dim_inner) ** (-0.5)

    compute_dtype = jnp.bfloat16 if use_bf16 else jnp.float32
    cdt_bytes = jnp.dtype(compute_dtype).itemsize
    out_bytes = jnp.dtype(x.dtype).itemsize

    # bf16 exp only on chips with a bf16 EUP (not v5*).
    try:
        kind = jax.devices()[0].device_kind.lower()
    except Exception:
        kind = ""
    exp_bf16 = bool(use_bf16) and ("v5" not in kind)

    # ---- padded sizes: lane-dense features, tile-aligned sequence -----------
    d_in_p = _round_up(dim_in, 128)
    d_inner_p = _round_up(dim_inner, 128)
    d_out_p = _round_up(dim_out, 128)

    row_align = 16 if compute_dtype == jnp.bfloat16 else 8
    n_al = _round_up(N, row_align)
    tq = min(q_seq_tile, n_al)
    tk = min(kv_seq_tile, n_al)
    if tk > tq:
        tk = tq
    tq = (tq // tk) * tk            # make tq a multiple of tk
    n_pad = _round_up(N, tq)        # divisible by both tq and tk
    has_pad_n = n_pad > N

    # ---- wrapper-side (one-time) parameter preprocessing ---------------------
    xp = jnp.pad(x, ((0, 0), (0, n_pad - N), (0, d_in_p - dim_in)))
    xp = xp.astype(compute_dtype)

    wq = w_qkv[:, 0 * dim_inner:1 * dim_inner] * scale   # fold softmax scale into q
    wk = w_qkv[:, 1 * dim_inner:2 * dim_inner]
    wv = w_qkv[:, 2 * dim_inner:3 * dim_inner]

    def _pad_w(w):
        return jnp.pad(w, ((0, d_in_p - dim_in), (0, d_inner_p - dim_inner)))

    w_qkv_p = jnp.concatenate([_pad_w(wq), _pad_w(wk), _pad_w(wv)],
                              axis=1).astype(compute_dtype)          # (d_in_p, 3*di_p)
    w_out_p = jnp.pad(w_out, ((0, d_inner_p - dim_inner),
                              (0, d_out_p - dim_out))).astype(compute_dtype)
    b_out_p = jnp.pad(b_out, (0, d_out_p - dim_out)).reshape(1, d_out_p)
    b_out_p = b_out_p.astype(jnp.float32)

    # ---- kernel 1: QKV projection (weight column-tiled, single store/step) ----
    n_row_tiles = n_pad // tq
    proj_needed = 2 * cdt_bytes * (tq * d_in_p + d_in_p * d_inner_p
                                   + tq * d_inner_p)
    qkv = pl.pallas_call(
        _qkv_proj_kernel,
        out_shape=jax.ShapeDtypeStruct((B, n_pad, 3 * d_inner_p), compute_dtype),
        grid_spec=pltpu.PrefetchScalarGridSpec(
            num_scalar_prefetch=0,
            # Column axis outermost: each weight block is DMA'd exactly once.
            grid=(3, B, n_row_tiles),
            in_specs=[
                pl.BlockSpec((1, tq, d_in_p), lambda c, b, r: (b, r, 0)),
                pl.BlockSpec((d_in_p, d_inner_p), lambda c, b, r: (0, c)),
            ],
            out_specs=pl.BlockSpec((1, tq, d_inner_p), lambda c, b, r: (b, r, c)),
        ),
        compiler_params=pltpu.CompilerParams(
            dimension_semantics=("parallel", "parallel", "parallel"),
            vmem_limit_bytes=_vmem_limit_bytes(proj_needed)),
    )(xp, w_qkv_p)

    # ---- kernel 2: flash attention + fused output projection ------------------
    n_q_tiles = n_pad // tq
    n_k_tiles = n_pad // tk

    if causal:
        # Clamp K/V block indices so tiles above the diagonal repeat the previous
        # index and their DMA is elided by the pipeline.
        def _k_map(b, qi, ki):
            return (b, jnp.minimum(ki, (qi * tq + (tq - 1)) // tk), 1)

        def _v_map(b, qi, ki):
            return (b, jnp.minimum(ki, (qi * tq + (tq - 1)) // tk), 2)
    else:
        def _k_map(b, qi, ki):
            return (b, ki, 1)

        def _v_map(b, qi, ki):
            return (b, ki, 2)

    flash_needed = (2 * cdt_bytes * (tq * d_inner_p + 2 * tk * d_inner_p)
                    + 2 * out_bytes * tq * d_out_p
                    + cdt_bytes * d_inner_p * d_out_p + 4 * d_out_p
                    + 4 * tq * (d_inner_p + 2))
    flash_kernel = functools.partial(
        _flash_attn_kernel, tq=tq, tk=tk, n_valid=N, causal=causal,
        has_pad=has_pad_n, compute_dtype=compute_dtype, exp_bf16=exp_bf16)

    out = pl.pallas_call(
        flash_kernel,
        out_shape=jax.ShapeDtypeStruct((B, n_pad, d_out_p), x.dtype),
        grid_spec=pltpu.PrefetchScalarGridSpec(
            num_scalar_prefetch=0,
            grid=(B, n_q_tiles, n_k_tiles),
            in_specs=[
                pl.BlockSpec((1, tq, d_inner_p), lambda b, qi, ki: (b, qi, 0)),
                pl.BlockSpec((1, tk, d_inner_p), _k_map),
                pl.BlockSpec((1, tk, d_inner_p), _v_map),
                # Constant weights/bias: single resident VMEM copy (no dead
                # double buffer).
                pl.BlockSpec(memory_space=pltpu.MemorySpace.VMEM),
                pl.BlockSpec(memory_space=pltpu.MemorySpace.VMEM),
            ],
            out_specs=pl.BlockSpec((1, tq, d_out_p),
                                   lambda b, qi, ki: (b, qi, 0)),
            scratch_shapes=[
                pltpu.VMEM((tq, 1), jnp.float32),          # running max m
                pltpu.VMEM((tq, 1), jnp.float32),          # running sum l
                pltpu.VMEM((tq, d_inner_p), jnp.float32),  # accumulator
            ],
        ),
        compiler_params=pltpu.CompilerParams(
            dimension_semantics=("parallel", "parallel", "arbitrary"),
            vmem_limit_bytes=_vmem_limit_bytes(flash_needed)),
    )(qkv, qkv, qkv, w_out_p, b_out_p)

    return out[:, :N, :dim_out]


# --------------------------------------------------------------------------
# Pure-JAX reference mirroring the PyTorch forward.
# --------------------------------------------------------------------------
def attention_ref(x, w_qkv, w_out, b_out, *, dim_inner, causal=False):
    scale = float(dim_inner) ** (-0.5)
    qkv = jnp.einsum('bnd,de->bne', x, w_qkv)
    q, k, v = jnp.split(qkv, 3, axis=-1)
    sim = jnp.einsum('bid,bjd->bij', q, k) * scale
    if causal:
        n = sim.shape[-1]
        mask = jnp.triu(jnp.ones((n, n), dtype=bool), k=1)
        sim = jnp.where(mask[None], -jnp.finfo(sim.dtype).max, sim)
    attn = jax.nn.softmax(sim, axis=-1)
    out = jnp.einsum('bij,bjd->bid', attn, v)
    return jnp.einsum('bid,de->bie', out, w_out) + b_out


if __name__ == "__main__":
    B, N = 2, 8
    dim_in, dim_inner, dim_out = 32, 32, 32

    key = jax.random.PRNGKey(0)
    kx, kqkv, kwo, kbo = jax.random.split(key, 4)

    x = jax.random.normal(kx, (B, N, dim_in), dtype=jnp.float32)
    w_qkv = jax.random.normal(kqkv, (dim_in, 3 * dim_inner), dtype=jnp.float32) * 0.1
    w_out = jax.random.normal(kwo, (dim_inner, dim_out), dtype=jnp.float32) * 0.1
    b_out = jax.random.normal(kbo, (dim_out,), dtype=jnp.float32) * 0.1

    # 1) f32 MXU path (test-only), non-causal
    y = attention_pallas(x, w_qkv, w_out, b_out, dim_inner=dim_inner,
                         causal=False, use_bf16=False)
    y = jax.block_until_ready(y)
    y_ref = attention_ref(x, w_qkv, w_out, b_out, dim_inner=dim_inner, causal=False)
    assert y.shape == y_ref.shape
    assert jnp.allclose(y, y_ref, atol=5e-3, rtol=5e-3), "f32 non-causal mismatch"

    # 2) f32 path, causal, sequence length exercising padding/masking
    N2 = 6
    x2 = x[:, :N2]
    y2 = attention_pallas(x2, w_qkv, w_out, b_out, dim_inner=dim_inner,
                          causal=True, use_bf16=False)
    y2 = jax.block_until_ready(y2)
    y2_ref = attention_ref(x2, w_qkv, w_out, b_out, dim_inner=dim_inner, causal=True)
    assert jnp.allclose(y2, y2_ref, atol=5e-3, rtol=5e-3), "f32 causal mismatch"

    # 3) bf16 production path (f32 accumulation; bf16 exp on non-v5 chips)
    y3 = attention_pallas(x, w_qkv, w_out, b_out, dim_inner=dim_inner,
                          causal=False, use_bf16=True)
    y3 = jax.block_until_ready(y3)
    assert jnp.allclose(y3, y_ref, atol=5e-2, rtol=5e-2), "bf16 non-causal mismatch"

    # 4) bf16 production path, causal
    y4 = attention_pallas(x, w_qkv, w_out, b_out, dim_inner=dim_inner,
                          causal=True, use_bf16=True)
    y4 = jax.block_until_ready(y4)
    y4_ref = attention_ref(x, w_qkv, w_out, b_out, dim_inner=dim_inner, causal=True)
    assert jnp.allclose(y4, y4_ref, atol=5e-2, rtol=5e-2), "bf16 causal mismatch"

    print("KERNEL_OK")
</pallas_src>

<mosaic_0001>
module attributes {stable_mosaic.version = 11 : i64} {
  func.func @_qkv_proj_kernel(%arg0: i32, %arg1: i32, %arg2: i32, %arg3: memref<1x8x128xf32, #tpu.memory_space<vmem>>, %arg4: memref<128x128xf32, #tpu.memory_space<vmem>>, %arg5: memref<1x8x128xf32, #tpu.memory_space<vmem>>) attributes {dimension_semantics = [#tpu.dimension_semantics<parallel>, #tpu.dimension_semantics<parallel>, #tpu.dimension_semantics<parallel>], iteration_bounds = array<i64: 3, 2, 1>, scalar_prefetch = 0 : i64, scratch_operands = 0 : i64, tpu.core_type = #tpu.core_type<tc>, window_params = [{transform_indices = @transform_0, window_bounds = array<i64: 1, 8, 128>}, {transform_indices = @transform_1, window_bounds = array<i64: 128, 128>}, {transform_indices = @transform_2, window_bounds = array<i64: 1, 8, 128>}]} {
    %c0 = arith.constant 0 : index
    %c0_0 = arith.constant 0 : index
    %c0_1 = arith.constant 0 : index
    %0 = vector.load %arg3[%c0, %c0_0, %c0_1] : memref<1x8x128xf32, #tpu.memory_space<vmem>>, vector<1x8x128xf32>
    %1 = vector.shape_cast %0 : vector<1x8x128xf32> to vector<8x128xf32>
    %c0_2 = arith.constant 0 : index
    %c0_3 = arith.constant 0 : index
    %2 = vector.load %arg4[%c0_2, %c0_3] : memref<128x128xf32, #tpu.memory_space<vmem>>, vector<128x128xf32>
    %cst = arith.constant dense<0.000000e+00> : vector<8x128xf32>
    %3 = tpu.matmul %1, %2, %cst {dimension_numbers = #tpu.dot_dimension_numbers<[1], [0], [0], [1], [0, 0, 1, 1], [], []>} : vector<8x128xf32>, vector<128x128xf32>, vector<8x128xf32> -> vector<8x128xf32>
    %c0_4 = arith.constant 0 : index
    %c0_5 = arith.constant 0 : index
    %c0_6 = arith.constant 0 : index
    %4 = vector.load %arg5[%c0_4, %c0_5, %c0_6] : memref<1x8x128xf32, #tpu.memory_space<vmem>>, vector<1x8x128xf32>
    %5 = vector.shape_cast %4 : vector<1x8x128xf32> to vector<8x128xf32>
    %6 = vector.shape_cast %3 : vector<8x128xf32> to vector<1x8x128xf32>
    tpu.vector_store %arg5[%c0_4, %c0_5, %c0_6], %6 {strides = array<i32>} : memref<1x8x128xf32, #tpu.memory_space<vmem>>, vector<1x8x128xf32>,
    return
  }
  func.func @transform_0(%arg0: i32, %arg1: i32, %arg2: i32) -> (i32, i32, i32) {
    %c0_i32 = arith.constant 0 : i32
    %c0_i32_0 = arith.constant 0 : i32
    return %arg1, %arg2, %c0_i32 : i32, i32, i32
  }
  func.func @transform_1(%arg0: i32, %arg1: i32, %arg2: i32) -> (i32, i32) {
    %c0_i32 = arith.constant 0 : i32
    %c0_i32_0 = arith.constant 0 : i32
    return %c0_i32, %arg0 : i32, i32
  }
  func.func @transform_2(%arg0: i32, %arg1: i32, %arg2: i32) -> (i32, i32, i32) {
    %c0_i32 = arith.constant 0 : i32
    return %arg1, %arg2, %arg0 : i32, i32, i32
  }
}

</mosaic_0001>

<bundles_post_ra>
// kernel: tpu_custom_call.1
= control target key start
LH: loop header
LB: loop body
LE: loop exit
PB: predicated region body
PF: predicated region fallthrough
CT: control target
= control target key end

     0   :  { %s1259_s0 = inlined_call_operand.hbm [shape: f32[2,8,128], index: 0, kind: input, shape index: {}]   ;;  %s1260_s1 = inlined_call_operand.hbm [shape: f32[128,384], index: 1, kind: input, shape index: {}]   ;;  %s1261_s2 = inlined_call_operand.hbm [shape: f32[2,8,384], index: 2, kind: output, shape index: {}]  }
   0x1   :  { %1269 = sst [smem:[#allocation17_spill]] %s1259_s0 }
   0x2   :  { %7 = vsyncpa [#allocation3], 0 }
   0x3   :  { %9 = vsyncpa [#allocation3 + $0x1], 0 }
   0x4   :  { %10 = vsyncpa [#allocation6], 0 }
   0x5   :  { %12 = vsyncpa [#allocation6 + $0x1], 0 }
   0x6   :  { %13 = vsyncpa [#allocation4], 0 }
   0x7   :  { %15 = vsyncpa [#allocation4 + $0x1], 0  ;;  %s908_s9 = smov 0   ;;  %s910_s10 = smov 0  }
   0x8   :  { %s912_s11 = smov 0   ;;  %s914_s12 = smov 0  }
   0x9   :  { %s916_s13 = smov 0   ;;  %s918_s14 = smov 0  }
   0xa   :  { %s920_s15 = smov 0   ;;  %s922_s16 = smov 0  }
   0xb   :  { %s924_s17 = smov 0   ;;  %s926_s18 = smov 0  }
   0xc   :  { %s928_s19 = smov 0   ;;  %s930_s20 = smov 0  }
   0xd   :  { %s932_s21 = smov 0   ;;  %s934_s22 = smov 0  }
   0xe LB: > { %1270 = sst [smem:[#allocation11_spill]] %s874_s20  ;;  %s442_s23 = sadd.s32 4294967295, %s882_s22   ;;  %s882_s22 = sphi %s934_s22, %s21_s22   ;;  %s878_s21 = sphi %s932_s21, %s1308_s21   ;;  %s874_s20 = sphi %s930_s20, %s1297_s20   ;;  %s870_s19 = sphi %s928_s19, %s1296_s19   ;;  %s866_s18 = sphi %s926_s18, %s1295_s18   ;;  %s862_s17 = sphi %s924_s17, %s1307_s17   ;;  %s858_s16 = sphi %s922_s16, %s1306_s16   ;;  %s854_s15 = sphi %s920_s15, %s1305_s15   ;;  %s850_s14 = sphi %s918_s14, %s1304_s14   ;;  %s846_s13 = sphi %s916_s13, %s1303_s13   ;;  %s842_s12 = sphi %s914_s12, %s1302_s12   ;;  %s838_s11 = sphi %s912_s11, %s1301_s11   ;;  %s834_s10 = sphi %s910_s10, %s1300_s10   ;;  %s830_s9 = sphi %s908_s9, %s1299_s9  }
   0xf   : > { %1271 = sst [smem:[#allocation12_spill]] %s878_s21  ;;  %s443_s24 = sadd.s32 4294967294, %s882_s22  }
  0x10   : > { %s36_s25 = sadd.s32 1, %s874_s20  ;;  %s40_s26 = sadd.s32 1, %s878_s21 }
  0x11   : > { %p38_p0 = scmp.ge.s32.totalorder %s36_s25, 2  ;;  %s49_s27 = sadd.s32 1, %s862_s17 }
  0x12   : > { %p56_p1 = scmp.ne.s32.totalorder %s862_s17, %s858_s16  ;;  %p57_p2 = scmp.eq.s32.totalorder %s882_s22, 0 }
  0x13   : > { %s1310_s25 = smov (%p38_p0, %s36_s25), 0  ;;  %s1312_s26 = smov (!%p38_p0, %s40_s26), %s878_s21 }
  0x14   : > { %1272 = sst [smem:[#allocation13_spill]] %s1310_s25  ;;  %s44_s28 = ssub.s32 %s874_s20, %s1310_s25 }
  0x15   : > { %p991_p3 = por %p57_p2, %p56_p1  ;;  %p42_p4 = scmp.ge.s32.totalorder %s1312_s26, 3 }
  0x16   : > { %p47_p5 = scmp.eq.s32.totalorder %s44_s28, 0  ;;  %p62_p6 = scmp.ne.s32.totalorder %s858_s16, %s854_s15 }
  0x17   : > { %p63_p7 = scmp.eq.s32.totalorder %s442_s23, 0  ;;  %s1314_s26 = smov (%p42_p4, %s1312_s26), 0 }
  0x18   : > { %1274 = sst [smem:[#allocation14_spill]] %s1314_s26  ;;  %s72_s4 = ssub.s32 %s878_s21, %s1314_s26 }
  0x19   : > { %s1001_s30 = scalar_select %p47_p5, %s862_s17, %s49_s27  }
  0x1a   : > { %p1003_p8 = por %p63_p7, %p62_p6  ;;  %p73_p9 = scmp.eq.s32.totalorder %s72_s4, 0 }
  0x1b   : > { %1275 = sst [smem:[#allocation15_spill]] %s1001_s30  ;;  %s75_s5 = sadd.s32 1, %s850_s14 }
  0x1c   : > { %s1276_s3 = scalar_select %p1003_p8, 1, 0 }
  0x1d   : > { %p82_p10 = scmp.ne.s32.totalorder %s850_s14, %s846_s13  ;;  %p88_p11 = scmp.ne.s32.totalorder %s846_s13, %s842_s12 }
  0x1e   : > { %s1015_s6 = scalar_select %p73_p9, %s850_s14, %s75_s5  }
  0x1f   : > { %p1019_p12 = por %p82_p10, %p57_p2  ;;  %p1023_p13 = por %p88_p11, %p63_p7 }
  0x20   : > { %1277 = sst [smem:[#allocation16_spill]] %s1015_s6  ;;  %s102_s15 = sor.u32 %s72_s4, %s44_s28 }
  0x21   : > { %s1279_s8 = scalar_select %p1023_p13, 1, 0 }
  0x22   : > { %s105_s27 = sadd.s32 1, %s838_s11  ;;  %p103_p0 = scmp.eq.s32.totalorder %s102_s15, 0 }
  0x23   : > { %p115_p1 = scmp.ne.s32.totalorder %s838_s11, %s834_s10  ;;  %p116_p4 = scmp.eq.s32.totalorder %s442_s23, 5 }
  0x24   : > { %p121_p5 = scmp.ne.s32.totalorder %s834_s10, %s830_s9  ;;  %p122_p6 = scmp.eq.s32.totalorder %s443_s24, 5 }
  0x25   : > { %s1035_s12 = scalar_select %p103_p0, %s838_s11, %s105_s27  }
  0x26   : > { %p1037_p2 = por %p116_p4, %p115_p1  ;;  %p552_p7 = scmp.lt.s32.totalorder %s882_s22, 6 }
  0x27   : > { %p1044_p9 = por %p122_p6, %p121_p5  ;;  %s142_s4 = sand.u32 1, %s862_s17  }
  0x28   : > { %s1280_s5 = scalar_select %p1037_p2, 1, 0 }
  0x29   : > { %s1281_s28 = scalar_select %p1044_p9, 1, 0 }
  0x2a   : > { %s446_s15 = sshll.u32 %s142_s4, 3  ;;  %s447_s26 = sshll.u32 %s874_s20, 7 }
  0x2b   : > { %s1282_s0 = sld [smem:[#allocation17_spill]]  ;;  %s146_s27 = scalar_lea.vmem [#allocation2], %s446_s15 }
  0x2c   : > { %s154_s6 = sshll.u32 %s146_s27, 4  ;;  %p1059_p10 = pnand %p552_p7, %p991_p3  ;;  %s1055_s6 = int_to_ptr.vmem [resolvable:$true] %s154_s6 }
  0x2d   : > { %p1065_p11 = pnand %p552_p7, %p1019_p12 }
  0x2e   : > { %p674_p5 = pneg %p1059_p10 }
  0x31   : > { %s1053_s30 = scalar_lea.hbm %s1282_s0, %s447_s26  ;;  %s143_s26 = scalar_lea.sflag [#allocation3], %s142_s4 }
  0x32   : > { %s672_s15 = scalar_lea.hbm %s1053_s30, 128  ;;  %s677_s7 = scalar_lea.hbm %s1282_s0, 256 }
  0x33   : > { %p673_p4 = scmp.ne.s32.totalorder %s1053_s30, %s672_s15  ;;  %p678_p12 = scmp.lt.u32.totalorder %s1053_s30, %s1282_s0 }
  0x34   : > { %p679_p7 = scmp.lt.u32.totalorder %s677_s7, %s672_s15  ;;  %p681_p1 = scmp.lt.u32.totalorder %s672_s15, %s1053_s30 }
  0x35   : > { %p675_p3 = pnand %p674_p5, %p673_p4 }
  0x36   : > { %p680_p0 = por %p679_p7, %p678_p12 }
  0x37   : > { %p676_p6 = pneg %p675_p3 }
  0x38   : > { %p682_p9 = por %p681_p1, %p680_p0 }
  0x3a   : > { %p683_p2 = pnand %p682_p9, %p676_p6 }
  0x3c   : > { %686 = shalt.err (!%p683_p2)
}
  0x3d   : > { %s687_s4 = scalar_lea.vmem %s1055_s6, 128  ;;  %s884_s29 = smov [#allocation2]  }
  0x3e   : > { %p688_p4 = scmp.ne.s32.totalorder %s1055_s6, %s687_s4  ;;  %s692_s23 = sshll.u32 %s884_s29, 4  ;;  %s693_s23 = int_to_ptr.vmem [resolvable:$false] %s692_s23 }
  0x3f   : > { %s694_s20 = scalar_lea.vmem %s693_s23, 256  ;;  %p695_p8 = scmp.lt.s32.totalorder %s1055_s6, %s693_s23 }
  0x40   : > { %p690_p3 = pnand %p688_p4, %p674_p5  ;;  %p696_p12 = scmp.lt.s32.totalorder %s694_s20, %s687_s4 }
  0x42   : > { %p691_p13 = pneg %p690_p3  ;;  %p697_p7 = por %p696_p12, %p695_p8 }
  0x44   : > { %p698_p0 = pnand %p697_p7, %p691_p13 }
  0x46   : > { %701 = shalt.err (!%p698_p0)
}
  0x47   : > { %544 = dma.hbm_to_vmem [thread:$0]  (!%p1059_p10), %s1053_s30, 128, %s1055_s6, %s143_s26  }
  0x48   : > { %p1285_p2 = scmp.lt.s32.totalorder %s882_s22, 7  ;;  %p1286_p9 = scmp.ge.s32.totalorder %s882_s22, 1 }
  0x49   : > { %s161_s7 = sand.u32 1, %s850_s14   ;;  %s449_s27 = sshll.u32 %s878_s21, 7 }
  0x4a   : > { %p1100_p1 = pnand %p1286_p9, %p1285_p2  ;;  %s448_s4 = sshll.u32 %s161_s7, 7 }
  0x4b   : > { %s1109_s23 = scalar_lea.hbm %s1260_s1, %s449_s27  ;;  %s165_s20 = scalar_lea.vmem [#allocation5], %s448_s4 }
  0x4c   : > { %s171_s30 = sshll.u32 %s165_s20, 4  ;;  %s1113_s6 = scalar_lea.sflag [#allocation6], %s161_s7  ;;  %s1111_s30 = int_to_ptr.vmem [resolvable:$true] %s171_s30 }
  0x4d   : > { %s702_s26 = scalar_lea.hbm %s1109_s23, 2048  ;;  %p704_p13 = pneg %p1065_p11 }
  0x4e   : > { %p703_p8 = scmp.ne.s32.totalorder %s1109_s23, %s702_s26  ;;  %s707_s24 = scalar_lea.hbm %s1260_s1, 6144 }
  0x4f   : > { %p708_p6 = scmp.lt.u32.totalorder %s1109_s23, %s1260_s1  ;;  %p709_p4 = scmp.lt.u32.totalorder %s707_s24, %s702_s26 }
  0x50   : > { %p705_p10 = pnand %p704_p13, %p703_p8  ;;  %p711_p12 = scmp.lt.u32.totalorder %s702_s26, %s1109_s23 }
  0x51   : > { %p710_p3 = por %p709_p4, %p708_p6 }
  0x52   : > { %p706_p5 = pneg %p705_p10 }
  0x53   : > { %p712_p7 = por %p711_p12, %p710_p3 }
  0x55   : > { %p713_p0 = pnand %p712_p7, %p706_p5 }
  0x57   : > { %716 = shalt.err (!%p713_p0)
}
  0x58   : > { %s717_s7 = scalar_lea.vmem %s1111_s30, 2048  ;;  %s885_s4 = smov [#allocation5]  }
  0x59   : > { %p718_p2 = scmp.ne.s32.totalorder %s1111_s30, %s717_s7  ;;  %s722_s20 = sshll.u32 %s885_s4, 4  ;;  %s723_s20 = int_to_ptr.vmem [resolvable:$false] %s722_s20 }
  0x5a   : > { %s724_s0 = scalar_lea.vmem %s723_s20, 4096  ;;  %p725_p10 = scmp.lt.s32.totalorder %s1111_s30, %s723_s20 }
  0x5b   : > { %p720_p9 = pnand %p718_p2, %p704_p13  ;;  %p726_p6 = scmp.lt.s32.totalorder %s724_s0, %s717_s7 }
  0x5d   : > { %p721_p8 = pneg %p720_p9  ;;  %p727_p4 = por %p726_p6, %p725_p10 }
  0x5f   : > { %p728_p3 = pnand %p727_p4, %p721_p8 }
  0x61   : > { %731 = shalt.err (!%p728_p3)
}
  0x62   : > { %s886_s21 = smov 384   ;;  %s887_s26 = smov 128  }
  0x63   : > { %s888_s27 = smov 8   ;;  %183 = sbr.rel (%p1100_p1) target bundleno = 371 (0x173), region = 28 }
  0x64   : > { %547 = dma.hbm_to_vmem [thread:$0]  (!%p1065_p11), %s1109_s23, 2048, %s1111_s30, %s1113_s6, %s886_s21, %s887_s26, %s888_s27  }
  0x65   : > { %s185_s29 = sand.u32 (!%p1100_p1), 1, %s858_s16   ;;  %p1288_p13 = scmp.ne.s32.totalorder (!%p1100_p1), %s1276_s3, 0 }
  0x66   : > { %s1144_s24 = sshll.u32 (!%p1100_p1), %s185_s29, 3  ;;  %s186_s7 = scalar_lea.sflag (!%p1100_p1), [#allocation3], %s185_s29 }
  0x67   : > { %s189_s4 = scalar_lea.vmem (!%p1100_p1), [#allocation2], %s1144_s24 }
  0x6a   : > { %817 = dma.done.wait (%p1288_p13), %s186_s7, 128  }
  0x6b   : > { %819 = vsyncadd (%p1288_p13), %s186_s7, 4294967168  ;;  %s194_s25 = sand.u32 1, %s846_s13   ;;  %p1289_p11 = scmp.ne.s32.totalorder %s1279_s8, 0 }
  0x6c   : > { %s452_s23 = sshll.u32 %s194_s25, 7  ;;  %s195_s30 = scalar_lea.sflag [#allocation6], %s194_s25 }
  0x6d   : > { %s1152_s15 = scalar_lea.vmem [#allocation5], %s452_s23 }
  0x6e   : > { %821 = dma.done.wait (%p1289_p11), %s195_s30, 2048  }
  0x6f   : > { %823 = vsyncadd (%p1289_p11), %s195_s30, 4294965248  ;;  %v889_v0 = vmov 0.0|0.0   ;;  %vm890_vm0 = vmmov 0   ;;  %v891_v1 = vmov 0.0   ;;  %v225_v2 = vld [vmem:[%s1152_s15] sm:$0xff]  ;;  %v226_v3 = vld [vmem:[%s1152_s15 + $0x8] sm:$0xff] }
  0x70   : > { %510 = vmatprep.subr.bf16.mxu0 %v889_v0  ;;  %507 = vmatprep.mubr.msk.f32.mxu0 %vm890_vm0, %v891_v1  ;;  %v227_v4 = vld [vmem:[%s1152_s15 + $0x10] sm:$0xff]  ;;  %v511_v5 = vpack.c.bf16 %v226_v3, %v225_v2  ;;  %v228_v6 = vld [vmem:[%s1152_s15 + $0x18] sm:$0xff]  ;;  %v229_v8 = vld [vmem:[%s1152_s15 + $0x20] sm:$0xff]  ;;  %s221_s3 = sand.u32 1, %s834_s10   ;;  %s534_s6 = smul.u32 3, %s866_s18 }
  0x71   : > { %v514_v7 = vpack.c.bf16 %v228_v6, %v227_v4  ;;  %v230_v9 = vld [vmem:[%s1152_s15 + $0x28] sm:$0xff]  ;;  %v231_v11 = vld [vmem:[%s1152_s15 + $0x30] sm:$0xff]  ;;  %v232_v12 = vld [vmem:[%s1152_s15 + $0x38] sm:$0xff]  ;;  %s453_s8 = sshll.u32 %s221_s3, 3  ;;  %s313_s24 = scalar_lea.sflag [#allocation4], %s221_s3 }
  0x72   : > { %512 = vmatpush3.bf16.msra.mxu0 %v511_v5  ;;  %v517_v10 = vpack.c.bf16 %v230_v9, %v229_v8  ;;  %v520_v13 = vpack.c.bf16 %v232_v12, %v231_v11  ;;  %v233_v14 = vld [vmem:[%s1152_s15 + $0x40] sm:$0xff]  ;;  %v234_v15 = vld [vmem:[%s1152_s15 + $0x48] sm:$0xff]  ;;  %v235_v17 = vld [vmem:[%s1152_s15 + $0x50] sm:$0xff]  ;;  %s326_s20 = sadd.s32 %s870_s19, %s534_s6  ;;  %s223_s0 = scalar_lea.vmem [#allocation7], %s453_s8 }
  0x73   : > { %513 = vmatprep.subr.bf16.mxu0 %v889_v0  ;;  %v523_v16 = vpack.c.bf16 %v234_v15, %v233_v14  ;;  %v236_v18 = vld [vmem:[%s1152_s15 + $0x58] sm:$0xff]  ;;  %v237_v20 = vld [vmem:[%s1152_s15 + $0x60] sm:$0xff]  ;;  %v238_v21 = vld [vmem:[%s1152_s15 + $0x68] sm:$0xff]  ;;  %s330_s21 = sshll.u32 %s223_s0, 4  ;;  %s455_s26 = sshll.u32 %s326_s20, 7  ;;  %s1179_s21 = int_to_ptr.vmem [resolvable:$true] %s330_s21 }
  0x74   : > { %v526_v19 = vpack.c.bf16 %v236_v18, %v235_v17  ;;  %v529_v22 = vpack.c.bf16 %v238_v21, %v237_v20  ;;  %v239_v23 = vld [vmem:[%s1152_s15 + $0x70] sm:$0xff]  ;;  %v240_v24 = vld [vmem:[%s1152_s15 + $0x78] sm:$0xff]  ;;  %s1184_s7 = scalar_lea.hbm %s1261_s2, %s455_s26  ;;  %p1290_p5 = scmp.ne.s32.totalorder %s1280_s5, 0 }
  0x75   : > { %v532_v25 = vpack.c.bf16 %v240_v24, %v239_v23  ;;  %v224_v26 = vld [vmem:[%s189_s4] sm:$0xff]  ;;  %s732_s4 = scalar_lea.vmem %s1179_s21, 128  ;;  %s892_s18 = smov [#allocation7]  }
  0x76   : > { %515 = vmatpush3.bf16.msra.mxu0 %v514_v7  ;;  %p733_p1 = scmp.ne.s32.totalorder %s1179_s21, %s732_s4  ;;  %s736_s19 = sshll.u32 %s892_s18, 4  ;;  %s737_s19 = int_to_ptr.vmem [resolvable:$false] %s736_s19 }
  0x77   : > { %516 = vmatprep.subr.bf16.mxu0 %v889_v0  ;;  %s738_s25 = scalar_lea.vmem %s737_s19, 256  ;;  %p739_p0 = scmp.lt.s32.totalorder %s1179_s21, %s737_s19 }
  0x78   : > { %p734_p12 = pnand %p733_p1, %p1290_p5  ;;  %p740_p2 = scmp.lt.s32.totalorder %s738_s25, %s732_s4 }
  0x7a   : > { %518 = vmatpush3.bf16.msra.mxu0 %v517_v10  ;;  %p735_p7 = pneg %p734_p12  ;;  %p741_p9 = por %p740_p2, %p739_p0 }
  0x7b   : > { %519 = vmatprep.subr.bf16.mxu0 %v889_v0 }
  0x7c   : > { %p742_p8 = pnand %p741_p9, %p735_p7 }
  0x7e   : > { %521 = vmatpush3.bf16.msra.mxu0 %v520_v13 }
  0x7f   : > { %522 = vmatprep.subr.bf16.mxu0 %v889_v0 }
  0x82   : > { %524 = vmatpush3.bf16.msra.mxu0 %v523_v16 }
  0x83   : > { %525 = vmatprep.subr.bf16.mxu0 %v889_v0 }
  0x86   : > { %527 = vmatpush3.bf16.msra.mxu0 %v526_v19 }
  0x87   : > { %528 = vmatprep.subr.bf16.mxu0 %v889_v0 }
  0x8a   : > { %530 = vmatpush3.bf16.msra.mxu0 %v529_v22 }
  0x8b   : > { %531 = vmatprep.subr.bf16.mxu0 %v889_v0 }
  0x8e   : > { %533 = vmatpush3.bf16.msra.mxu0 %v532_v25 }
  0x91   : > { %508 = vmatmul.mubr.f32.vlgmr.msra.gmra.mrb[0].mxu0 %v224_v26 }
 0x164   : > { %v307_v27 = vpop.f32.mrb[0].mxu0 }
 0x165   : > { %311 = vst [vmem:[%s223_s0] sm:$0xff] %v307_v27  ;;  %v509_v28 = vpop.f32.mrb[1].mxu0 }
 0x166   : > { %745 = shalt.err (!%p742_p8)
}
 0x167   : > { %s746_s23 = scalar_lea.hbm %s1184_s7, 128  ;;  %s750_s3 = scalar_lea.hbm %s1261_s2, 768 }
 0x168   : > { %p747_p10 = scmp.ne.s32.totalorder %s1184_s7, %s746_s23  ;;  %p751_p3 = scmp.lt.u32.totalorder %s1184_s7, %s1261_s2 }
 0x169   : > { %p752_p13 = scmp.lt.u32.totalorder %s750_s3, %s746_s23  ;;  %p754_p1 = scmp.lt.u32.totalorder %s746_s23, %s1184_s7 }
 0x16a   : > { %p748_p6 = pnand %p747_p10, %p1290_p5 }
 0x16b   : > { %p753_p11 = por %p752_p13, %p751_p3 }
 0x16c   : > { %p749_p4 = pneg %p748_p6 }
 0x16d   : > { %p755_p12 = por %p754_p1, %p753_p11 }
 0x16f   : > { %p756_p7 = pnand %p755_p12, %p749_p4 }
 0x171   : > { %759 = shalt.err (!%p756_p7)
}
 0x172   : > { %539 = dma.vmem_to_hbm [thread:$0]  (%p1290_p5), %s1179_s21, 128, %s1184_s7, %s313_s24  }
 0x173 PF: > { %p553_p0 = scmp.ge.s32.totalorder %s882_s22, 2  ;;  %s342_s20 = sand.u32 1, %s830_s9  }
 0x174   : > { %p1291_p2 = scmp.ne.s32.totalorder %s1281_s28, 0  ;;  %s343_s0 = scalar_lea.sflag [#allocation4], %s342_s20 }
 0x176   : > { %p549_p9 = pnand %p553_p0, %p1291_p2 }
 0x178   : > { %825 = dma.done.wait (!%p549_p9), %s343_s0, 128  }
 0x179   : > { %827 = vsyncadd (!%p549_p9), %s343_s0, 4294967168  ;;  %s21_s22 = sadd.s32 1, %s882_s22   ;;  %s1293_s5 = sld [smem:[#allocation16_spill]] }
 0x17a   : > { %p1212_p8 = scmp.ge.s32.totalorder %s21_s22, 8   ;;  %s1294_s21 = sld [smem:[#allocation15_spill]] }
 0x17b   : > { %s1295_s18 = sld [smem:[#allocation11_spill]]  ;;  %s1296_s19 = sld [smem:[#allocation12_spill]] }
 0x17c   : > { %s1297_s20 = sld [smem:[#allocation13_spill]]  ;;  %s1298_s28 = sld [smem:[#allocation14_spill]] }
 0x17d   : > { %s1299_s9 = smov %s834_s10  ;;  %s1300_s10 = smov %s838_s11 }
 0x17e   : > { %s1301_s11 = smov %s1035_s12  ;;  %s1302_s12 = smov %s846_s13 }
 0x17f   : > { %s1303_s13 = smov %s850_s14  ;;  %s1304_s14 = smov %s1293_s5 }
 0x180   : > { %s1305_s15 = smov %s858_s16  ;;  %s1306_s16 = smov %s862_s17 }
 0x181   : > { %s1307_s17 = smov %s1294_s21  ;;  %20 = sbr.rel (!%p1212_p8) target bundleno = 14 (0xe), region = 86 }
 0x182   : > { %s1308_s21 = smov %s1298_s28 }
 0x188   :  { %348 = vsyncpa [#allocation3], 1 }
 0x189   :  { %350 = vsyncpa [#allocation3 + $0x1], 1 }
 0x18a   :  { %351 = vsyncpa [#allocation6], 1 }
 0x18b   :  { %353 = vsyncpa [#allocation6 + $0x1], 1 }
 0x18c   :  { %354 = vsyncpa [#allocation4], 1 }
 0x18d   :  { %356 = vsyncpa [#allocation4 + $0x1], 1 }

</bundles_post_ra>
